<compile_context>
chip_gen: v7x
topology: tpu7x:2x2x1
jax: 0.10.0
libtpu: 0.0.40
codegen_flags: <defaults>
</compile_context>

<pallas_src>
import jax
import jax.numpy as jnp
from jax.experimental import pallas as pl
from jax.experimental.pallas import tpu as pltpu


def _make_clip_loss_kernel(n_total: int, tile_m: int):
    def kernel(scale_ref, sims_ref, out_ref,
               col_max_ref, col_sum_ref, diag_ref, rowlse_ref):
        # scale_ref: (1,1) SMEM; sims_ref: (TM, N) VMEM block; out_ref: (1,1) VMEM
        # scratch: col_max (1,N), col_expsum (1,N), diag_sum (1,1), sum_lse_row (1,1)
        i = pl.program_id(0)

        @pl.when(i == 0)
        def _init():
            col_max_ref[...] = jnp.full_like(col_max_ref, -jnp.inf)
            col_sum_ref[...] = jnp.zeros_like(col_sum_ref)
            diag_ref[...] = jnp.zeros_like(diag_ref)
            rowlse_ref[...] = jnp.zeros_like(rowlse_ref)

        logit_scale = jnp.exp(scale_ref[0, 0])
        logits = sims_ref[...].astype(jnp.float32) * logit_scale        # (TM, N) f32

        # ---- per-row (dim=1) log-sum-exp: each tile holds complete rows ----
        row_max = jnp.max(logits, axis=1, keepdims=True)                # (TM, 1)  XLU
        e_row = jnp.exp(logits - row_max)                               # (TM, N)  EUP
        ones_n = jnp.ones((n_total, 1), dtype=jnp.float32)
        row_sum = jnp.dot(e_row, ones_n,
                          preferred_element_type=jnp.float32)           # (TM, 1)  MXU
        lse_row = row_max + jnp.log(row_sum)
        rowlse_ref[...] += jnp.sum(lse_row, keepdims=True)

        # ---- online per-column (dim=0) log-sum-exp accumulation ----
        tile_col_max = jnp.max(logits, axis=0, keepdims=True)           # (1, N)   XLU
        col_max_new = jnp.maximum(col_max_ref[...], tile_col_max)
        rescale = jnp.exp(col_max_ref[...] - col_max_new)               # (1, N)
        e_col = jnp.exp(logits - col_max_new)                           # (TM, N)  EUP
        ones_tm = jnp.ones((1, tile_m), dtype=jnp.float32)
        tile_col_sum = jnp.dot(ones_tm, e_col,
                               preferred_element_type=jnp.float32)      # (1, N)   MXU
        col_sum_ref[...] = col_sum_ref[...] * rescale + tile_col_sum
        col_max_ref[...] = col_max_new

        # ---- diagonal of this row tile (broadcast iota compare, no (N,N) int temps) ----
        row_ids = jax.lax.broadcasted_iota(jnp.int32, (tile_m, 1), 0) + i * tile_m
        col_ids = jax.lax.broadcasted_iota(jnp.int32, (1, n_total), 1)
        diag_mask = row_ids == col_ids                                  # (TM, N) bool
        diag_ref[...] += jnp.sum(jnp.where(diag_mask, logits, 0.0), keepdims=True)

        # ---- finalize on the last row tile ----
        @pl.when(i == pl.num_programs(0) - 1)
        def _finalize():
            lse_col = col_max_ref[...] + jnp.log(col_sum_ref[...])      # (1, N)
            sum_lse_col = jnp.sum(lse_col, keepdims=True)               # (1, 1)
            total = -(2.0 * diag_ref[...] - rowlse_ref[...] - sum_lse_col) / (2.0 * n_total)
            out_ref[...] = total

    return kernel


def _pick_tile_m(n: int, row_budget_bytes: int = 2 * 1024 * 1024) -> int:
    """Largest TM such that a (TM, N) f32 tile stays within budget, TM divides N,
    and TM is a multiple of 8 (or TM == N).  Keeps the full working set (block
    double-buffer + f32 temporaries) comfortably inside scoped VMEM on v5e/v6e/v7x."""
    max_rows = max(8, row_budget_bytes // (4 * n))
    if n <= max_rows:
        return n
    tm = (min(max_rows, n) // 8) * 8
    while tm >= 8:
        if n % tm == 0:
            return tm
        tm -= 8
    return n  # no multiple-of-8 divisor: fall back to a single full block


def clip_loss(sims: jax.Array, logit_scale: jax.Array, *, tile_m: int | None = None) -> jax.Array:
    """sims: (N, N) similarity matrix (rows=text, cols=video), any float dtype.
    logit_scale: scalar (log of the temperature inverse).  Returns scalar f32 loss."""
    n = sims.shape[0]
    assert sims.ndim == 2 and sims.shape[1] == n, "sims must be square (N, N)"
    if tile_m is None:
        tile_m = _pick_tile_m(n)
    assert n % tile_m == 0, "tile_m must divide N"
    assert tile_m % 8 == 0 or tile_m == n, "tile_m must be a multiple of 8 (or == N)"
    grid = (n // tile_m,)

    scale_2d = jnp.reshape(logit_scale.astype(jnp.float32), (1, 1))
    itemsize = jnp.dtype(sims.dtype).itemsize
    cost = pl.CostEstimate(
        flops=8 * n * n,                 # ones-vector matmul sums + elementwise work
        transcendentals=2 * n * n,       # two exp passes (per-row and per-column LSE)
        bytes_accessed=n * n * itemsize + 8,
    )

    kernel = _make_clip_loss_kernel(n, tile_m)
    out = pl.pallas_call(
        kernel,
        out_shape=jax.ShapeDtypeStruct((1, 1), jnp.float32),
        grid=grid,
        in_specs=[
            pl.BlockSpec(memory_space=pltpu.SMEM),               # scalar logit_scale
            pl.BlockSpec((tile_m, n), lambda i: (i, 0)),          # lane-dense row tile
        ],
        out_specs=pl.BlockSpec((1, 1), lambda i: (0, 0)),         # resident accumulator
        scratch_shapes=[
            pltpu.VMEM((1, n), jnp.float32),   # running column max
            pltpu.VMEM((1, n), jnp.float32),   # running column exp-sum
            pltpu.VMEM((1, 1), jnp.float32),   # diagonal sum
            pltpu.VMEM((1, 1), jnp.float32),   # sum of row LSEs
        ],
        compiler_params=pltpu.CompilerParams(
            dimension_semantics=("arbitrary",),          # column accumulators carry state
            vmem_limit_bytes=32 * 1024 * 1024,           # safe on v5e/v6e/v7x budgets
        ),
        cost_estimate=cost,
    )(scale_2d, sims)
    # TODO(synk): on v7x the row-tile axis could be split across the 2 TensorCores
    # (core_map + partial column accumulators); kept single-core here for portability.
    return out[0, 0]


def _clip_loss_ref(sims, logit_scale):
    # pure-JAX reference mirroring the PyTorch module
    logits = sims.astype(jnp.float32) * jnp.exp(logit_scale)
    t2v = jnp.diag(jax.nn.log_softmax(logits, axis=1))
    v2t = jnp.diag(jax.nn.log_softmax(logits, axis=0))
    return (-jnp.mean(t2v) - jnp.mean(v2t)) / 2.0


if __name__ == "__main__":
    key = jax.random.PRNGKey(0)
    k1, _ = jax.random.split(key)

    logit_scale = jnp.asarray(jnp.log(1.0 / 0.07), dtype=jnp.float32)  # CLIP-style init

    # main test: N=256, forced 64-row tiles -> 4 grid steps, exercises the online
    # column-LSE accumulation and the pl.when init/finalize path.
    N = 256
    sims = jax.random.normal(k1, (N, N), dtype=jnp.float32)
    loss = clip_loss(sims, logit_scale, tile_m=64)
    jax.block_until_ready(loss)
    ref = _clip_loss_ref(sims, logit_scale)
    assert jnp.allclose(loss, ref, atol=1e-3, rtol=2e-4), (loss, ref)

    # native-dtype (bf16) streaming path: block stays bf16 in HBM/VMEM, cast per tile.
    sims_bf16 = sims.astype(jnp.bfloat16)
    loss_bf16 = clip_loss(sims_bf16, logit_scale, tile_m=64)
    jax.block_until_ready(loss_bf16)
    ref_bf16 = _clip_loss_ref(sims_bf16, logit_scale)
    assert jnp.allclose(loss_bf16, ref_bf16, atol=2e-3, rtol=1e-3), (loss_bf16, ref_bf16)

    # tiny toy shape from the original module (single-tile path).
    N_small = 8
    sims_small = jax.random.normal(k1, (N_small, N_small), dtype=jnp.float32)
    loss_small = clip_loss(sims_small, logit_scale)
    jax.block_until_ready(loss_small)
    ref_small = _clip_loss_ref(sims_small, logit_scale)
    assert jnp.allclose(loss_small, ref_small, atol=1e-4, rtol=1e-4), (loss_small, ref_small)

    print("KERNEL_OK")
</pallas_src>

<mosaic_0001>
module attributes {stable_mosaic.version = 11 : i64} {
  func.func @kernel(%arg0: i32, %arg1: memref<1x1xf32, #tpu.memory_space<smem>>, %arg2: memref<64x256xf32, #tpu.memory_space<vmem>>, %arg3: memref<1x1xf32, #tpu.memory_space<vmem>>, %arg4: memref<1x256xf32, #tpu.memory_space<vmem>>, %arg5: memref<1x256xf32, #tpu.memory_space<vmem>>, %arg6: memref<1x1xf32, #tpu.memory_space<vmem>>, %arg7: memref<1x1xf32, #tpu.memory_space<vmem>>) attributes {dimension_semantics = [#tpu.dimension_semantics<arbitrary>], iteration_bounds = array<i64: 4>, scalar_prefetch = 0 : i64, scratch_operands = 4 : i64, tpu.core_type = #tpu.core_type<tc>, window_params = [{transform_indices = @transform_0, window_bounds = array<i64: 1, 1>}, {transform_indices = @transform_1, window_bounds = array<i64: 64, 256>}, {pipeline_mode = #tpu.pipeline_mode<synchronous>, transform_indices = @transform_2, window_bounds = array<i64: 1, 1>}]} {
    %c0_i32 = arith.constant 0 : i32
    %0 = arith.cmpi eq, %arg0, %c0_i32 : i32
    %1 = arith.extui %0 : i1 to i32
    %c0_i32_0 = arith.constant 0 : i32
    %2 = arith.cmpi ne, %1, %c0_i32_0 : i32
    scf.if %2 {
      %cst_31 = arith.constant 0xFF800000 : f32
      %63 = vector.broadcast %cst_31 : f32 to vector<1x256xf32>
      %c0_32 = arith.constant 0 : index
      %c0_33 = arith.constant 0 : index
      %64 = vector.load %arg4[%c0_32, %c0_33] : memref<1x256xf32, #tpu.memory_space<vmem>>, vector<1x256xf32>
      tpu.vector_store %arg4[%c0_32, %c0_33], %63 {strides = array<i32>} : memref<1x256xf32, #tpu.memory_space<vmem>>, vector<1x256xf32>,
      %cst_34 = arith.constant 0.000000e+00 : f32
      %65 = vector.broadcast %cst_34 : f32 to vector<1x256xf32>
      %c0_35 = arith.constant 0 : index
      %c0_36 = arith.constant 0 : index
      %66 = vector.load %arg5[%c0_35, %c0_36] : memref<1x256xf32, #tpu.memory_space<vmem>>, vector<1x256xf32>
      tpu.vector_store %arg5[%c0_35, %c0_36], %65 {strides = array<i32>} : memref<1x256xf32, #tpu.memory_space<vmem>>, vector<1x256xf32>,
      %cst_37 = arith.constant 0.000000e+00 : f32
      %67 = vector.broadcast %cst_37 : f32 to vector<1x1xf32>
      %c0_38 = arith.constant 0 : index
      %c0_39 = arith.constant 0 : index
      %68 = vector.load %arg6[%c0_38, %c0_39] : memref<1x1xf32, #tpu.memory_space<vmem>>, vector<1x1xf32>
      tpu.vector_store %arg6[%c0_38, %c0_39], %67 {strides = array<i32>} : memref<1x1xf32, #tpu.memory_space<vmem>>, vector<1x1xf32>,
      %cst_40 = arith.constant 0.000000e+00 : f32
      %69 = vector.broadcast %cst_40 : f32 to vector<1x1xf32>
      %c0_41 = arith.constant 0 : index
      %c0_42 = arith.constant 0 : index
      %70 = vector.load %arg7[%c0_41, %c0_42] : memref<1x1xf32, #tpu.memory_space<vmem>>, vector<1x1xf32>
      tpu.vector_store %arg7[%c0_41, %c0_42], %69 {strides = array<i32>} : memref<1x1xf32, #tpu.memory_space<vmem>>, vector<1x1xf32>,
    } else {
    }
    %c0 = arith.constant 0 : index
    %c0_1 = arith.constant 0 : index
    %3 = memref.load %arg1[%c0, %c0_1] : memref<1x1xf32, #tpu.memory_space<smem>>
    %4 = math.exp %3 : f32
    %c0_2 = arith.constant 0 : index
    %c0_3 = arith.constant 0 : index
    %5 = vector.load %arg2[%c0_2, %c0_3] : memref<64x256xf32, #tpu.memory_space<vmem>>, vector<64x256xf32>
    %6 = vector.broadcast %4 : f32 to vector<64x256xf32>
    %7 = arith.mulf %5, %6 : vector<64x256xf32>
    %cst = arith.constant dense<0xFF800000> : vector<64xf32>
    %8 = vector.multi_reduction <maximumf>, %7, %cst [1] : vector<64x256xf32> to vector<64xf32>
    %9 = vector.shape_cast %8 : vector<64xf32> to vector<64x1xf32>
    %10 = vector.broadcast %9 : vector<64x1xf32> to vector<64x256xf32>
    %11 = arith.subf %7, %10 : vector<64x256xf32>
    %12 = math.exp %11 : vector<64x256xf32>
    %cst_4 = arith.constant 1.000000e+00 : f32
    %13 = vector.broadcast %cst_4 : f32 to vector<256x1xf32>
    %cst_5 = arith.constant dense<0.000000e+00> : vector<64x1xf32>
    %14 = tpu.matmul %12, %13, %cst_5 {dimension_numbers = #tpu.dot_dimension_numbers<[1], [0], [0], [1], [0, 0, 1, 1], [], []>} : vector<64x256xf32>, vector<256x1xf32>, vector<64x1xf32> -> vector<64x1xf32>
    %15 = math.log %14 : vector<64x1xf32>
    %16 = arith.addf %9, %15 : vector<64x1xf32>
    %c0_6 = arith.constant 0 : index
    %c0_7 = arith.constant 0 : index
    %17 = vector.load %arg7[%c0_6, %c0_7] : memref<1x1xf32, #tpu.memory_space<vmem>>, vector<1x1xf32>
    %18 = vector.shape_cast %16 : vector<64x1xf32> to vector<1x64x1xf32>
    %cst_8 = arith.constant dense<0.000000e+00> : vector<1xf32>
    %19 = vector.multi_reduction <add>, %18, %cst_8 [1, 2] : vector<1x64x1xf32> to vector<1xf32>
    %20 = vector.shape_cast %19 : vector<1xf32> to vector<1x1x1xf32>
    %21 = vector.extract %20[0, 0, 0] : f32 from vector<1x1x1xf32>
    %22 = vector.broadcast %21 : f32 to vector<1x1xf32>
    %23 = arith.addf %17, %22 : vector<1x1xf32>
    %c0_9 = arith.constant 0 : index
    %c0_10 = arith.constant 0 : index
    %24 = vector.load %arg7[%c0_9, %c0_10] : memref<1x1xf32, #tpu.memory_space<vmem>>, vector<1x1xf32>
    tpu.vector_store %arg7[%c0_9, %c0_10], %23 {strides = array<i32>} : memref<1x1xf32, #tpu.memory_space<vmem>>, vector<1x1xf32>,
    %cst_11 = arith.constant dense<0xFF800000> : vector<256xf32>
    %25 = vector.multi_reduction <maximumf>, %7, %cst_11 [0] : vector<64x256xf32> to vector<256xf32>
    %26 = vector.shape_cast %25 : vector<256xf32> to vector<1x256xf32>
    %c0_12 = arith.constant 0 : index
    %c0_13 = arith.constant 0 : index
    %27 = vector.load %arg4[%c0_12, %c0_13] : memref<1x256xf32, #tpu.memory_space<vmem>>, vector<1x256xf32>
    %28 = arith.maximumf %27, %26 : vector<1x256xf32>
    %c0_14 = arith.constant 0 : index
    %c0_15 = arith.constant 0 : index
    %29 = vector.load %arg4[%c0_14, %c0_15] : memref<1x256xf32, #tpu.memory_space<vmem>>, vector<1x256xf32>
    %30 = arith.subf %29, %28 : vector<1x256xf32>
    %31 = math.exp %30 : vector<1x256xf32>
    %32 = vector.broadcast %28 : vector<1x256xf32> to vector<64x256xf32>
    %33 = arith.subf %7, %32 : vector<64x256xf32>
    %34 = math.exp %33 : vector<64x256xf32>
    %cst_16 = arith.constant 1.000000e+00 : f32
    %35 = vector.broadcast %cst_16 : f32 to vector<1x64xf32>
    %cst_17 = arith.constant dense<0.000000e+00> : vector<1x256xf32>
    %36 = tpu.matmul %35, %34, %cst_17 {dimension_numbers = #tpu.dot_dimension_numbers<[1], [0], [0], [1], [0, 0, 1, 1], [], []>} : vector<1x64xf32>, vector<64x256xf32>, vector<1x256xf32> -> vector<1x256xf32>
    %c0_18 = arith.constant 0 : index
    %c0_19 = arith.constant 0 : index
    %37 = vector.load %arg5[%c0_18, %c0_19] : memref<1x256xf32, #tpu.memory_space<vmem>>, vector<1x256xf32>
    %38 = arith.mulf %37, %31 : vector<1x256xf32>
    %39 = arith.addf %38, %36 : vector<1x256xf32>
    %c0_20 = arith.constant 0 : index
    %c0_21 = arith.constant 0 : index
    %40 = vector.load %arg5[%c0_20, %c0_21] : memref<1x256xf32, #tpu.memory_space<vmem>>, vector<1x256xf32>
    tpu.vector_store %arg5[%c0_20, %c0_21], %39 {strides = array<i32>} : memref<1x256xf32, #tpu.memory_space<vmem>>, vector<1x256xf32>,
    %c0_22 = arith.constant 0 : index
    %c0_23 = arith.constant 0 : index
    %41 = vector.load %arg4[%c0_22, %c0_23] : memref<1x256xf32, #tpu.memory_space<vmem>>, vector<1x256xf32>
    tpu.vector_store %arg4[%c0_22, %c0_23], %28 {strides = array<i32>} : memref<1x256xf32, #tpu.memory_space<vmem>>, vector<1x256xf32>,
    %42 = tpu.iota {dimensions = array<i32: 0>} : vector<64x1xi32>
    %c64_i32 = arith.constant 64 : i32
    %43 = arith.muli %arg0, %c64_i32 : i32
    %44 = vector.broadcast %43 : i32 to vector<64x1xi32>
    %45 = arith.addi %42, %44 : vector<64x1xi32>
    %46 = tpu.iota {dimensions = array<i32: 1>} : vector<1x256xi32>
    %47 = vector.broadcast %45 : vector<64x1xi32> to vector<64x256xi32>
    %48 = vector.broadcast %46 : vector<1x256xi32> to vector<64x256xi32>
    %49 = arith.cmpi eq, %47, %48 : vector<64x256xi32>
    %c0_24 = arith.constant 0 : index
    %c0_25 = arith.constant 0 : index
    %50 = vector.load %arg6[%c0_24, %c0_25] : memref<1x1xf32, #tpu.memory_space<vmem>>, vector<1x1xf32>
    %cst_26 = arith.constant 0.000000e+00 : f32
    %51 = vector.broadcast %cst_26 : f32 to vector<64x256xf32>
    %52 = arith.select %49, %7, %51 : vector<64x256xi1>, vector<64x256xf32>
    %53 = vector.shape_cast %52 : vector<64x256xf32> to vector<1x64x256xf32>
    %cst_27 = arith.constant dense<0.000000e+00> : vector<1xf32>
    %54 = vector.multi_reduction <add>, %53, %cst_27 [1, 2] : vector<1x64x256xf32> to vector<1xf32>
    %55 = vector.shape_cast %54 : vector<1xf32> to vector<1x1x1xf32>
    %56 = vector.extract %55[0, 0, 0] : f32 from vector<1x1x1xf32>
    %57 = vector.broadcast %56 : f32 to vector<1x1xf32>
    %58 = arith.addf %50, %57 : vector<1x1xf32>
    %c0_28 = arith.constant 0 : index
    %c0_29 = arith.constant 0 : index
    %59 = vector.load %arg6[%c0_28, %c0_29] : memref<1x1xf32, #tpu.memory_space<vmem>>, vector<1x1xf32>
    tpu.vector_store %arg6[%c0_28, %c0_29], %58 {strides = array<i32>} : memref<1x1xf32, #tpu.memory_space<vmem>>, vector<1x1xf32>,
    %c3_i32 = arith.constant 3 : i32
    %60 = arith.cmpi eq, %arg0, %c3_i32 : i32
    %61 = arith.extui %60 : i1 to i32
    %c0_i32_30 = arith.constant 0 : i32
    %62 = arith.cmpi ne, %61, %c0_i32_30 : i32
    scf.if %62 {
      %c0_31 = arith.constant 0 : index
      %c0_32 = arith.constant 0 : index
      %63 = vector.load %arg4[%c0_31, %c0_32] : memref<1x256xf32, #tpu.memory_space<vmem>>, vector<1x256xf32>
      %c0_33 = arith.constant 0 : index
      %c0_34 = arith.constant 0 : index
      %64 = vector.load %arg5[%c0_33, %c0_34] : memref<1x256xf32, #tpu.memory_space<vmem>>, vector<1x256xf32>
      %65 = math.log %64 : vector<1x256xf32>
      %66 = arith.addf %63, %65 : vector<1x256xf32>
      %67 = vector.shape_cast %66 : vector<1x256xf32> to vector<1x1x256xf32>
      %cst_35 = arith.constant dense<0.000000e+00> : vector<1xf32>
      %68 = vector.multi_reduction <add>, %67, %cst_35 [1, 2] : vector<1x1x256xf32> to vector<1xf32>
      %69 = vector.shape_cast %68 : vector<1xf32> to vector<1x1x1xf32>
      %70 = vector.extract %69[0, 0, 0] : f32 from vector<1x1x1xf32>
      %71 = vector.broadcast %70 : f32 to vector<1x1xf32>
      %c0_36 = arith.constant 0 : index
      %c0_37 = arith.constant 0 : index
      %72 = vector.load %arg6[%c0_36, %c0_37] : memref<1x1xf32, #tpu.memory_space<vmem>>, vector<1x1xf32>
      %cst_38 = arith.constant 2.000000e+00 : f32
      %73 = vector.broadcast %cst_38 : f32 to vector<1x1xf32>
      %74 = arith.mulf %73, %72 : vector<1x1xf32>
      %c0_39 = arith.constant 0 : index
      %c0_40 = arith.constant 0 : index
      %75 = vector.load %arg7[%c0_39, %c0_40] : memref<1x1xf32, #tpu.memory_space<vmem>>, vector<1x1xf32>
      %76 = arith.subf %74, %75 : vector<1x1xf32>
      %77 = arith.subf %76, %71 : vector<1x1xf32>
      %cst_41 = arith.constant 0.000000e+00 : f32
      %78 = vector.broadcast %cst_41 : f32 to vector<1x1xf32>
      %79 = arith.subf %78, %77 : vector<1x1xf32>
      %cst_42 = arith.constant 5.120000e+02 : f32
      %80 = vector.broadcast %cst_42 : f32 to vector<1x1xf32>
      %81 = arith.divf %79, %80 : vector<1x1xf32>
      %c0_43 = arith.constant 0 : index
      %c0_44 = arith.constant 0 : index
      %82 = vector.load %arg3[%c0_43, %c0_44] : memref<1x1xf32, #tpu.memory_space<vmem>>, vector<1x1xf32>
      tpu.vector_store %arg3[%c0_43, %c0_44], %81 {strides = array<i32>} : memref<1x1xf32, #tpu.memory_space<vmem>>, vector<1x1xf32>,
    } else {
    }
    return
  }
  func.func @transform_0(%arg0: i32) -> (i32, i32) {
    %c0_i32 = arith.constant 0 : i32
    %c0_i32_0 = arith.constant 0 : i32
    %c0_i32_1 = arith.constant 0 : i32
    return %c0_i32, %c0_i32_0 : i32, i32
  }
  func.func @transform_1(%arg0: i32) -> (i32, i32) {
    %c0_i32 = arith.constant 0 : i32
    %c0_i32_0 = arith.constant 0 : i32
    return %arg0, %c0_i32 : i32, i32
  }
  func.func @transform_2(%arg0: i32) -> (i32, i32) {
    %c0_i32 = arith.constant 0 : i32
    %c0_i32_0 = arith.constant 0 : i32
    %c0_i32_1 = arith.constant 0 : i32
    return %c0_i32, %c0_i32_0 : i32, i32
  }
}

</mosaic_0001>

<bundles_post_ra>
// kernel: tpu_custom_call.1
= control target key start
LH: loop header
LB: loop body
LE: loop exit
PB: predicated region body
PF: predicated region fallthrough
CT: control target
= control target key end

     0   :  { %s1607_s0 = inlined_call_operand.<no memory space> [shape: f32[1,1], index: 0, kind: input, shape index: {}]   ;;  %s1608_s1 = inlined_call_operand.hbm [shape: f32[256,256], index: 1, kind: input, shape index: {}]   ;;  %s1609_s2 = inlined_call_operand.hbm [shape: f32[1,1], index: 2, kind: output, shape index: {}]  }
   0x1   :  { %7 = sst [smem:[#allocation6]] %s1607_s0 }
   0x2   :  { %8 = vsyncpa [#allocation8], 0 }
   0x3   :  { %10 = vsyncpa [#allocation8 + $0x1], 0 }
   0x4   :  { %11 = vsyncpa [#allocation9], 0  ;;  %s1206_s11 = smov 0   ;;  %s1208_s12 = smov 0  }
   0x5   :  { %s1210_s13 = smov 0   ;;  %s1212_s14 = smov 0  }
   0x6 LB: > { %s1225_s0 = sadd.s32 4294967295, %s1176_s14   ;;  %s1228_s15 = sadd.s32 1, %s1176_s14   ;;  %s1176_s14 = sphi %s1212_s14, %s1618_s14   ;;  %s1172_s13 = sphi %s1210_s13, %s1617_s13   ;;  %s1168_s12 = sphi %s1208_s12, %s1616_s12   ;;  %s1164_s11 = sphi %s1206_s11, %s1615_s11  }
   0x7   : > { %s42_s16 = ssub.s32 %s1176_s14, %s1228_s15  ;;  %s45_s17 = sadd.s32 1, %s1172_s13 }
   0x8   : > { %p43_p0 = scmp.eq.s32.totalorder %s42_s16, 0  ;;  %p52_p1 = scmp.ne.s32.totalorder %s1172_s13, %s1168_s12 }
   0x9   : > { %p53_p2 = scmp.eq.s32.totalorder %s1176_s14, 0  ;;  %p58_p3 = scmp.ne.s32.totalorder %s1168_s12, %s1164_s11 }
   0xa   : > { %s1238_s18 = scalar_select %p43_p0, %s1172_s13, %s45_s17  }
   0xb   : > { %p54_p4 = por %p53_p2, %p52_p1  ;;  %p59_p5 = scmp.eq.s32.totalorder %s1225_s0, 0 }
   0xc   : > { %p952_p6 = scmp.lt.s32.totalorder %s1176_s14, 4  ;;  %s106_s20 = sand.u32 1, %s1172_s13  }
   0xd   : > { %p1242_p7 = por %p59_p5, %p58_p3  ;;  %s830_s21 = sshll.u32 %s106_s20, 7 }
   0xe   : > { %s845_s22 = sshll.u32 %s1176_s14, 11  ;;  %s110_s26 = scalar_lea.vmem [#allocation7], %s830_s21 }
   0xf   : > { %s1251_s25 = scalar_lea.hbm %s1608_s1, %s845_s22  ;;  %s118_s27 = sshll.u32 %s110_s26, 4  ;;  %s1253_s27 = int_to_ptr.vmem [resolvable:$true] %s118_s27 }
  0x10   : > { %p1255_p8 = pnand %p952_p6, %p54_p4  ;;  %s1260_s29 = scalar_lea.sflag [#allocation8], %s106_s20 }
  0x11   : > { %s1082_s30 = scalar_lea.hbm %s1251_s25, 2048  ;;  %s1087_s5 = scalar_lea.hbm %s1608_s1, 8192 }
  0x12   : > { %p1083_p10 = scmp.ne.s32.totalorder %s1251_s25, %s1082_s30  ;;  %p1084_p11 = pneg %p1255_p8 }
  0x13   : > { %p1088_p0 = scmp.lt.u32.totalorder %s1251_s25, %s1608_s1  ;;  %p1089_p1 = scmp.lt.u32.totalorder %s1087_s5, %s1082_s30 }
  0x14   : > { %p1085_p12 = pnand %p1084_p11, %p1083_p10  ;;  %p1091_p3 = scmp.lt.u32.totalorder %s1082_s30, %s1251_s25 }
  0x15   : > { %p1090_p2 = por %p1089_p1, %p1088_p0 }
  0x16   : > { %p1086_p13 = pneg %p1085_p12 }
  0x17   : > { %p1092_p4 = por %p1091_p3, %p1090_p2 }
  0x19   : > { %p1093_p5 = pnand %p1092_p4, %p1086_p13 }
  0x1b   : > { %1096 = shalt.err (!%p1093_p5)
}
  0x1c   : > { %s1097_s8 = scalar_lea.vmem %s1253_s27, 2048  ;;  %s1178_s9 = smov [#allocation7]  }
  0x1d   : > { %p1098_p6 = scmp.ne.s32.totalorder %s1253_s27, %s1097_s8  ;;  %s1102_s10 = sshll.u32 %s1178_s9, 4  ;;  %s1103_s10 = int_to_ptr.vmem [resolvable:$false] %s1102_s10 }
  0x1e   : > { %s1104_s11 = scalar_lea.vmem %s1103_s10, 4096  ;;  %p1105_p9 = scmp.lt.s32.totalorder %s1253_s27, %s1103_s10 }
  0x1f   : > { %p1100_p10 = pnand %p1098_p6, %p1084_p11  ;;  %p1106_p0 = scmp.lt.s32.totalorder %s1104_s11, %s1097_s8 }
  0x21   : > { %p1101_p12 = pneg %p1100_p10  ;;  %p1107_p1 = por %p1106_p0, %p1105_p9 }
  0x23   : > { %p1108_p2 = pnand %p1107_p1, %p1101_p12 }
  0x25   : > { %1111 = shalt.err (!%p1108_p2)
}
  0x26   : > { %s1179_s16 = smov 256   ;;  %s1180_s17 = smov 16  }
  0x27   : > { %951 = dma.hbm_to_vmem [thread:$0]  (!%p1255_p8), %s1251_s25, 2048, %s1253_s27, %s1260_s29, %s1179_s16, %s1179_s16, %s1180_s17  }
  0x28   : > { %p126_p11 = scmp.lt.s32.totalorder %s1176_s14, 5  ;;  %p1612_p13 = scmp.ge.s32.totalorder %s1176_s14, 1 }
  0x2a   : > { %p127_p3 = pnand %p1612_p13, %p126_p11 }
  0x2b   : > { %s132_s20 = sand.u32 (!%p127_p3), 1, %s1168_s12  }
  0x2c   : > { %130 = sbr.rel (%p127_p3) target bundleno = 808 (0x328), region = 28  ;;  %s835_s21 = sshll.u32 (!%p127_p3), %s132_s20, 7 }
  0x2d   : > { %s133_s22 = scalar_lea.sflag (!%p127_p3), [#allocation8], %s132_s20  ;;  %s1292_s23 = scalar_lea.vmem (!%p127_p3), [#allocation7], %s835_s21 }
  0x33   : > { %1155 = dma.done.wait (%p1242_p7), %s133_s22, 2048  }
  0x34   : > { %1157 = vsyncadd (%p1242_p7), %s133_s22, 4294965248  ;;  %p836_p9 = scmp.ne.s32.totalorder %s1225_s0, 0 }
  0x35   : > { %v157_v0 = vlaneseq (!%p836_p9)  ;;  %vm163_vm0 = vcmask (!%p836_p9), 0   ;;  %v1181_v1 = vmov (!%p836_p9), 0.0   ;;  %v1182_v2 = vmov (!%p836_p9), -inf  }
  0x36   : > { %156 = sbr.rel (%p836_p9) target bundleno = 61 (0x3d), region = 36  ;;  %164 = vst.msk [vmem:[#allocation4] sm:$0x1] (!%p836_p9), %vm163_vm0, %v1181_v1  ;;  %165 = vst.msk [vmem:[#allocation5] sm:$0x1] (!%p836_p9), %vm163_vm0, %v1181_v1 }
  0x37   : > { %vm159_vm1 = vcmp.lt.s32.totalorder (!%p836_p9), %v157_v0, 256 }
  0x38   : > { %161 = vst.msk [vmem:[#allocation2] sm:$0x3] (!%p836_p9), %vm159_vm1, %v1182_v2  ;;  %162 = vst.msk [vmem:[#allocation3] sm:$0x3] (!%p836_p9), %vm159_vm1, %v1181_v1 }
  0x3d PF: > { %s166_s14 = sld [smem:[#allocation6]]  ;;  %v1183_v5 = vmov 0.0   ;;  %v1184_v6 = vmov 1.0|1.0   ;;  %v468_v8 = vlaneseq  ;;  %s838_s19 = sshll.u32 %s1225_s0, 6  ;;  %v175_v11 = vld [vmem:[%s1292_s23 + $0x20] sm:$0xff] }
  0x3e   : > { %611 = vmatprep.mubr.f32.mxu1 %v1183_v5  ;;  %902 = vmatprep.subr.bf16.mxu0 %v1184_v6  ;;  %v176_v12 = vld [vmem:[%s1292_s23 + $0x28] sm:$0xff]  ;;  %v1306_v13 = vstv %s838_s19  ;;  %v171_v14 = vld [vmem:[%s1292_s23] sm:$0xff]  ;;  %v177_v16 = vld [vmem:[%s1292_s23 + $0x30] sm:$0xff]  ;;  %p839_p7 = scmp.ne.s32.totalorder %s1225_s0, 3 }
  0x3f   : > { %903 = vmatpush3.bf16.msra.mxu0 %v1184_v6  ;;  %v1300_v9 = vshrl.u32 %v468_v8, 7  ;;  %v172_v15 = vld [vmem:[%s1292_s23 + $0x8] sm:$0xff]  ;;  %v178_v17 = vld [vmem:[%s1292_s23 + $0x38] sm:$0xff]  ;;  %v173_v18 = vld [vmem:[%s1292_s23 + $0x10] sm:$0xff]  ;;  %v1315_v20 = vand.u32 127, %v468_v8  ;;  %vm1446_vm14 = vcmp.lt.s32.totalorder %v468_v8, 256 }
  0x40   : > { %904 = vmatprep.subr.bf16.mxu0 %v1184_v6  ;;  %v174_v19 = vld [vmem:[%s1292_s23 + $0x18] sm:$0xff]  ;;  %v181_v32 = vld [vmem:[%s1292_s23 + $0x50] sm:$0xff]  ;;  %v179_v34 = vld [vmem:[%s1292_s23 + $0x40] sm:$0xff] }
  0x41   : > { %v647_v10 = vadd.s32 8, %v1300_v9  ;;  %v656_v22 = vadd.s32 %v1306_v13, %v1300_v9  ;;  %v182_v33 = vld [vmem:[%s1292_s23 + $0x58] sm:$0xff]  ;;  %v180_v38 = vld [vmem:[%s1292_s23 + $0x48] sm:$0xff]  ;;  %v185_v39 = vld [vmem:[%s1292_s23 + $0x70] sm:$0xff]  ;;  %v1351_v41 = vadd.s32 128, %v1315_v20  ;;  %v648_v0 = vadd.s32 16, %v1300_v9 }
  0x42   : > { %v186_v40 = vld [vmem:[%s1292_s23 + $0x78] sm:$0xff]  ;;  %v183_v46 = vld [vmem:[%s1292_s23 + $0x60] sm:$0xff]  ;;  %v184_v50 = vld [vmem:[%s1292_s23 + $0x68] sm:$0xff] }
  0x43   : > { %v167_v3 = vstv %s166_s14  ;;  %905 = vmatpush3.bf16.msra.mxu0 %v1184_v6  ;;  %v1320_v23 = vadd.s32 %v1306_v13, %v647_v10  ;;  %vm667_vm2 = vcmp.eq.s32.totalorder %v656_v22, %v1315_v20  ;;  %vm668_vm3 = vcmp.eq.s32.totalorder %v656_v22, %v1351_v41 }
  0x44   : > { %v168_v4 = vmul.f32 1.442695, %v167_v3  ;;  %906 = vmatprep.subr.bf16.mxu0 %v1184_v6 }
  0x45   : > { %vm669_vm4 = vcmp.eq.s32.totalorder %v1320_v23, %v1315_v20  ;;  %vm670_vm5 = vcmp.eq.s32.totalorder %v1320_v23, %v1351_v41 }
  0x46   : > { %996 = vpow2.f32 %v168_v4 }
  0x47   : > { %907 = vmatpush3.bf16.msra.mxu0 %v1184_v6 }
  0x48   : > { %908 = vmatprep.subr.bf16.mxu0 %v1184_v6 }
  0x4b   : > { %909 = vmatpush3.bf16.msra.mxu0 %v1184_v6 }
  0x4c   : > { %910 = vmatprep.subr.bf16.mxu0 %v1184_v6 }
  0x4f   : > { %911 = vmatpush3.bf16.msra.mxu0 %v1184_v6 }
  0x50   : > { %v997_v7 = vpop.eup %996  ;;  %912 = vmatprep.subr.bf16.mxu0 %v1184_v6 }
  0x51   : > { %934 = vpush %v997_v7 }
  0x53   : > { %913 = vmatpush3.bf16.msra.mxu0 %v1184_v6 }
  0x54   : > { %914 = vmatprep.subr.bf16.mxu0 %v1184_v6 }
  0x57   : > { %915 = vmatpush3.bf16.msra.mxu0 %v1184_v6 }
  0x58   : > { %916 = vmatprep.subr.bf16.mxu0 %v1184_v6 }
  0x5b   : > { %917 = vmatpush3.bf16.msra.mxu0 %v1184_v6 }
  0x82   : > { %s935_s24 = spop %934 }
  0x83   : > { %v187_v21 = vstv %s935_s24 }
  0x84   : > { %v1322_v24 = vmul.f32 %v187_v21, %v175_v11  ;;  %v1324_v25 = vmul.f32 %v187_v21, %v176_v12  ;;  %v1326_v26 = vmul.f32 %v187_v21, %v171_v14  ;;  %v1328_v27 = vmul.f32 %v187_v21, %v172_v15 }
  0x85   : > { %v1330_v28 = vmul.f32 %v187_v21, %v177_v16  ;;  %v1332_v29 = vmul.f32 %v187_v21, %v178_v17  ;;  %v1334_v30 = vmul.f32 %v187_v21, %v173_v18  ;;  %v1336_v31 = vmul.f32 %v187_v21, %v174_v19 }
  0x86   : > { %v210_v35 = vmax.f32 %v1322_v24, %v1324_v25  ;;  %v204_v36 = vmax.f32 %v1326_v26, %v1328_v27  ;;  %v435_v37 = vmax.f32 %v1326_v26, %v1322_v24  ;;  %v448_v42 = vmax.f32 %v1328_v27, %v1324_v25 }
  0x87   : > { %v213_v43 = vmax.f32 %v1330_v28, %v1332_v29  ;;  %v436_v44 = vmax.f32 %v1334_v30, %v1330_v28  ;;  %v449_v45 = vmax.f32 %v1336_v31, %v1332_v29  ;;  %v1362_v47 = vmul.f32 %v187_v21, %v181_v32 }
  0x88   : > { %211 = vmax.xlane.f32.xlu1 %v210_v35  ;;  %205 = vmax.xlane.f32.xlu0 %v204_v36  ;;  %v1364_v48 = vmul.f32 %v187_v21, %v182_v33  ;;  %v1366_v49 = vmul.f32 %v187_v21, %v179_v34  ;;  %v207_v51 = vmax.f32 %v1334_v30, %v1336_v31  ;;  %v684_v6 = vsel %vm667_vm2, %v1326_v26, 0.0 }
  0x89   : > { %v1371_v52 = vmul.f32 %v187_v21, %v180_v38  ;;  %v1373_v53 = vmul.f32 %v187_v21, %v185_v39  ;;  %v1375_v54 = vmul.f32 %v187_v21, %v186_v40  ;;  %v438_v55 = vmax.f32 %v436_v44, %v1362_v47 }
  0x8a   : > { %v451_v56 = vmax.f32 %v449_v45, %v1364_v48  ;;  %v437_v57 = vmax.f32 %v435_v37, %v1366_v49  ;;  %v1380_v58 = vmul.f32 %v187_v21, %v183_v46  ;;  %v1383_v60 = vmul.f32 %v187_v21, %v184_v50 }
  0x8b   : > { %v450_v59 = vmax.f32 %v448_v42, %v1371_v52  ;;  %v440_v61 = vmax.f32 %v438_v55, %v1373_v53  ;;  %v219_v2 = vmax.f32 %v1362_v47, %v1364_v48  ;;  %v216_v3 = vmax.f32 %v1366_v49, %v1371_v52 }
  0x8c   : > { %214 = vmax.xlane.f32.xlu1 %v213_v43  ;;  %208 = vmax.xlane.f32.xlu0 %v207_v51  ;;  %v453_v62 = vmax.f32 %v451_v56, %v1375_v54  ;;  %v439_v63 = vmax.f32 %v437_v57, %v1380_v58  ;;  %v685_v7 = vsel %vm668_vm3, %v1328_v27, 0.0  ;;  %v649_v11 = vadd.s32 24, %v1300_v9 }
  0x8d   : > { %v452_v1 = vmax.f32 %v450_v59, %v1383_v60  ;;  %v658_v12 = vadd.s32 %v1306_v13, %v648_v0  ;;  %v225_v15 = vmax.f32 %v1373_v53, %v1375_v54  ;;  %v222_v16 = vmax.f32 %v1380_v58, %v1383_v60 }
  0x8e   : > { %v441_v4 = vmax.f32 %v439_v63, %v440_v61  ;;  %v700_v18 = vadd.f32 %v685_v7, %v684_v6  ;;  %v1185_v21 = vmov 1966171168   ;;  %v650_v32 = vadd.s32 32, %v1300_v9 }
  0x8f   : > { %v454_v5 = vmax.f32 %v452_v1, %v453_v62  ;;  %v466_v22 = vunpack.c.l.s4 %v1185_v21  ;;  %v686_v33 = vsel %vm669_vm4, %v1334_v30, 0.0  ;;  %v659_v35 = vadd.s32 %v1306_v13, %v649_v11  ;;  %v1436_v11 = vld [vmem:[#allocation2] sm:$0x3] }
  0x90   : > { %220 = vmax.xlane.f32.xlu1 %v219_v2  ;;  %217 = vmax.xlane.f32.xlu0 %v216_v3  ;;  %v442_v10 = vrot.slane %v441_v4, 4  ;;  %vm671_vm6 = vcmp.eq.s32.totalorder %v658_v12, %v1315_v20  ;;  %v701_v36 = vadd.f32 %v700_v18, %v686_v33  ;;  %v687_v38 = vsel %vm670_vm5, %v1336_v31, 0.0 }
  0x91   : > { %v455_v14 = vrot.slane %v454_v5, 4  ;;  %vm672_vm7 = vcmp.eq.s32.totalorder %v658_v12, %v1351_v41  ;;  %v467_v43 = vunpack.c.0.s8 %v466_v22  ;;  %v651_v44 = vadd.s32 40, %v1300_v9 }
  0x92   : > { %v443_v17 = vmax.f32 %v441_v4, %v442_v10  ;;  %v702_v40 = vadd.f32 %v701_v36, %v687_v38  ;;  %v688_v45 = vsel %vm671_vm6, %v1322_v24, 0.0  ;;  %v660_v50 = vadd.s32 %v1306_v13, %v650_v32 }
  0x93   : > { %v456_v19 = vmax.f32 %v454_v5, %v455_v14  ;;  %vm673_vm8 = vcmp.eq.s32.totalorder %v659_v35, %v1315_v20  ;;  %v689_v23 = vsel %vm672_vm7, %v1324_v25, 0.0  ;;  %vm674_vm9 = vcmp.eq.s32.totalorder %v659_v35, %v1351_v41 }
  0x94   : > { %226 = vmax.xlane.f32.xlu1 %v225_v15  ;;  %v444_v34 = vrot.slane %v443_v17, 2  ;;  %223 = vmax.xlane.f32.xlu0 %v222_v16  ;;  %v703_v51 = vadd.f32 %v702_v40, %v688_v45  ;;  %v1424_v61 = vsub.s32 %v467_v43, %v1300_v9  ;;  %v652_v62 = vadd.s32 48, %v1300_v9 }
  0x95   : > { %v457_v37 = vrot.slane %v456_v19, 2  ;;  %v690_v63 = vsel %vm673_vm8, %v1330_v28, 0.0  ;;  %v661_v0 = vadd.s32 %v1306_v13, %v651_v44  ;;  %vm675_vm10 = vcmp.eq.s32.totalorder %v660_v50, %v1315_v20 }
  0x96   : > { %v445_v39 = vmax.f32 %v443_v17, %v444_v34  ;;  %v704_v57 = vadd.f32 %v703_v51, %v689_v23  ;;  %v691_v3 = vsel %vm674_vm9, %v1332_v29, 0.0  ;;  %v653_v4 = vadd.s32 56, %v1300_v9 }
  0x97   : > { %v458_v42 = vmax.f32 %v456_v19, %v457_v37  ;;  %vm676_vm11 = vcmp.eq.s32.totalorder %v660_v50, %v1351_v41  ;;  %v662_v7 = vadd.s32 %v1306_v13, %v652_v62  ;;  %v692_v10 = vsel %vm675_vm10, %v1366_v49, 0.0 }
  0x98   : > { %v446_v46 = vrot.slane %v445_v39, 1  ;;  %v705_v1 = vadd.f32 %v704_v57, %v690_v63  ;;  %vm677_vm12 = vcmp.eq.s32.totalorder %v661_v0, %v1315_v20  ;;  %v693_v15 = vsel %vm676_vm11, %v1371_v52, 0.0 }
  0x99   : > { %v459_v55 = vrot.slane %v458_v42, 1  ;;  %v491_v16 = vsub.s32 1, %v1300_v9  ;;  %v487_v17 = vsub.s32 0, %v1300_v9  ;;  %v663_v18 = vadd.s32 %v1306_v13, %v653_v4 }
  0x9a   : > { %v447_v56 = vmax.f32 %v445_v39, %v446_v46  ;;  %v706_v5 = vadd.f32 %v705_v1, %v691_v3  ;;  %vm678_vm13 = vcmp.eq.s32.totalorder %v661_v0, %v1351_v41  ;;  %vm679_vm15 = vcmp.eq.s32.totalorder %v662_v7, %v1315_v20 }
  0x9b   : > { %v460_v59 = vmax.f32 %v458_v42, %v459_v55  ;;  %v694_v32 = vsel %vm677_vm12, %v1362_v47, 0.0  ;;  %vm680_vm0 = vcmp.eq.s32.totalorder %v662_v7, %v1351_v41  ;;  %v695_v13 = vsel %vm678_vm13, %v1364_v48, 0.0 }
  0x9c   : > { %v707_v12 = vadd.f32 %v706_v5, %v692_v10  ;;  %vm681_vm1 = vcmp.eq.s32.totalorder %v663_v18, %v1315_v20  ;;  %v696_v36 = vsel %vm679_vm15, %v1380_v58, 0.0  ;;  %v697_v43 = vsel %vm680_vm0, %v1383_v60, 0.0 }
  0x9d   : > { %v464_v2 = vcombine.low %v447_v56, %v460_v59  ;;  %vm682_vm2 = vcmp.eq.s32.totalorder %v663_v18, %v1351_v41  ;;  %v698_v62 = vsel %vm681_vm1, %v1373_v53, 0.0  ;;  %vm543_vm3 = vcmask 523264  }
  0x9e   : > { %v708_v19 = vadd.f32 %v707_v12, %v693_v15  ;;  %v699_v4 = vsel %vm682_vm2, %v1375_v54, 0.0  ;;  %vm406_vm4 = vcmask 7168   ;;  %vm433_vm5 = vcmask 0  }
  0x9f   : > { %v471_v6 = vrot.slane %v464_v2, %v1424_v61  ;;  %vm747_vm6 = vcmask (!%p839_p7), 1040384  }
  0xa0   : > { %v709_v33 = vadd.f32 %v708_v19, %v694_v32 }
  0xa1   : > { %v478_v14 = vrot.slane %v471_v6, %v1424_v61 }
  0xa2   : > { %v710_v37 = vadd.f32 %v709_v33, %v695_v13 }
  0xa3   : > { %v1451_v22 = vmax.f32 %v1436_v11, %v478_v14 }
  0xa4   : > { %v711_v44 = vadd.f32 %v710_v37, %v696_v36 }
  0xa5   : > { %v492_v34 = vrot.slane %v1451_v22, %v491_v16  ;;  %v488_v8 = vrot.slane %v1451_v22, %v487_v17  ;;  %v481_v35 = vsub.f32 %v1436_v11, %v1451_v22  ;;  %644 = vst.msk [vmem:[#allocation2] sm:$0x3] %vm1446_vm14, %v1451_v22 }
  0xa6   : > { %v712_v56 = vadd.f32 %v711_v44, %v697_v43 }
  0xa7   : > { %v496_v38 = vsub.f32 %v1328_v27, %v492_v34  ;;  %v498_v39 = vsub.f32 %v1336_v31, %v492_v34  ;;  %v495_v40 = vsub.f32 %v1326_v26, %v488_v8  ;;  %v497_v42 = vsub.f32 %v1334_v30, %v488_v8 }
  0xa8   : > { %v500_v45 = vsub.f32 %v1324_v25, %v492_v34  ;;  %v502_v46 = vsub.f32 %v1332_v29, %v492_v34  ;;  %v499_v23 = vsub.f32 %v1322_v24, %v488_v8  ;;  %v501_v59 = vsub.f32 %v1330_v28, %v488_v8 }
  0xa9   : > { %v513_v50 = vmul.f32 1.442695, %v496_v38  ;;  %v517_v51 = vmul.f32 1.442695, %v498_v39  ;;  %v511_v55 = vmul.f32 1.442695, %v495_v40  ;;  %v504_v0 = vsub.f32 %v1371_v52, %v492_v34 }
  0xaa   : > { %v515_v57 = vmul.f32 1.442695, %v497_v42  ;;  %v521_v63 = vmul.f32 1.442695, %v500_v45  ;;  %v713_v1 = vadd.f32 %v712_v56, %v698_v62  ;;  %v525_v2 = vmul.f32 1.442695, %v502_v46 }
  0xab   : > { %998 = vpow2.f32 %v513_v50  ;;  %v506_v3 = vsub.f32 %v1364_v48, %v492_v34  ;;  %v519_v41 = vmul.f32 1.442695, %v499_v23  ;;  %v503_v5 = vsub.f32 %v1366_v49, %v488_v8 }
  0xac   : > { %1000 = vpow2.f32 %v517_v51  ;;  %v714_v6 = vadd.f32 %v713_v1, %v699_v4  ;;  %v523_v7 = vmul.f32 1.442695, %v501_v59  ;;  %v505_v20 = vsub.f32 %v1362_v47, %v488_v8 }
  0xad   : > { %1002 = vpow2.f32 %v511_v55  ;;  %v529_v10 = vmul.f32 1.442695, %v504_v0  ;;  %v508_v12 = vsub.f32 %v1383_v60, %v492_v34  ;;  %v533_v14 = vmul.f32 1.442695, %v506_v3 }
  0xae   : > { %1004 = vpow2.f32 %v515_v57  ;;  %715 = vadd.xlane.f32.xlu1 %v714_v6  ;;  %v510_v15 = vsub.f32 %v1375_v54, %v492_v34  ;;  %v527_v18 = vmul.f32 1.442695, %v503_v5  ;;  %v507_v19 = vsub.f32 %v1380_v58, %v488_v8 }
  0xaf   : > { %1006 = vpow2.f32 %v521_v63  ;;  %v531_v32 = vmul.f32 1.442695, %v505_v20  ;;  %v509_v33 = vsub.f32 %v1373_v53, %v488_v8  ;;  %v537_v13 = vmul.f32 1.442695, %v508_v12 }
  0xb0   : > { %1008 = vpow2.f32 %v525_v2  ;;  %v541_v36 = vmul.f32 1.442695, %v510_v15  ;;  %v535_v38 = vmul.f32 1.442695, %v507_v19  ;;  %v1186_v5 = vmov 1.0  }
  0xb1   : > { %1010 = vpow2.f32 %v519_v41  ;;  %v539_v40 = vmul.f32 1.442695, %v509_v33 }
  0xb2   : > { %1012 = vpow2.f32 %v523_v7 }
  0xb3   : > { %1014 = vpow2.f32 %v529_v10 }
  0xb4   : > { %1016 = vpow2.f32 %v533_v14 }
  0xb5   : > { %v999_v37 = vpop.eup %998  ;;  %1018 = vpow2.f32 %v527_v18 }
  0xb6   : > { %v1001_v39 = vpop.eup %1000  ;;  %1020 = vpow2.f32 %v531_v32 }
  0xb7   : > { %v1003_v42 = vpop.eup %1002  ;;  %v918_v34 = vpack.c.bf16 %v1001_v39, %v999_v37  ;;  %1022 = vpow2.f32 %v537_v13 }
  0xb8   : > { %v1005_v43 = vpop.eup %1004  ;;  %1024 = vpow2.f32 %v541_v36 }
  0xb9   : > { %v1007_v44 = vpop.eup %1006  ;;  %919 = vmatprep.subr.bf16.mxu1 %v918_v34  ;;  %v920_v45 = vpack.c.bf16 %v1005_v43, %v1003_v42  ;;  %1026 = vpow2.f32 %v535_v38 }
  0xba   : > { %v1009_v8 = vpop.eup %1008  ;;  %1028 = vpow2.f32 %v539_v40 }
  0xbb   : > { %v1011_v46 = vpop.eup %1010  ;;  %921 = vmatpush1.bf16.msra.mxu1 %v920_v45  ;;  %v922_v50 = vpack.c.bf16 %v1009_v8, %v1007_v44 }
  0xbc   : > { %v1013_v51 = vpop.eup %1012 }
  0xbd   : > { %v1015_v55 = vpop.eup %1014  ;;  %923 = vmatprep.subr.bf16.mxu1 %v922_v50  ;;  %v924_v23 = vpack.c.bf16 %v1013_v51, %v1011_v46 }
  0xbe   : > { %v1017_v56 = vpop.eup %1016 }
  0xbf   : > { %v1019_v57 = vpop.eup %1018  ;;  %925 = vmatpush1.bf16.msra.mxu1 %v924_v23  ;;  %v926_v59 = vpack.c.bf16 %v1017_v56, %v1015_v55 }
  0xc0   : > { %v1021_v62 = vpop.eup %1020 }
  0xc1   : > { %v1023_v63 = vpop.eup %1022  ;;  %927 = vmatprep.subr.bf16.mxu1 %v926_v59  ;;  %v928_v0 = vpack.c.bf16 %v1021_v62, %v1019_v57 }
  0xc2   : > { %v1025_v1 = vpop.eup %1024 }
  0xc3   : > { %v1027_v2 = vpop.eup %1026  ;;  %929 = vmatpush1.bf16.msra.mxu1 %v928_v0  ;;  %v930_v3 = vpack.c.bf16 %v1025_v1, %v1023_v63 }
  0xc4   : > { %v1029_v4 = vpop.eup %1028 }
  0xc5   : > { %931 = vmatprep.subr.bf16.mxu1 %v930_v3  ;;  %v932_v41 = vpack.c.bf16 %v1029_v4, %v1027_v2 }
  0xc7   : > { %933 = vmatpush1.bf16.msra.mxu1 %v932_v41 }
  0xca   : > { %837 = vmatmul.mubr.msk.f32.vlgmr.msra.gmra.mrb[0].mxu1 %vm543_vm3, %v1186_v5 }
 0x115   : > { %v1492_v6 = vpop.xlane.xlu0 %205  ;;  %v1494_v7 = vpop.xlane.xlu1 %211 }
 0x116   : > { %v228_v20 = vsub.f32 %v1326_v26, %v1492_v6  ;;  %v229_v10 = vsub.f32 %v1328_v27, %v1492_v6  ;;  %v233_v19 = vsub.f32 %v1324_v25, %v1494_v7  ;;  %v232_v27 = vsub.f32 %v1322_v24, %v1494_v7 }
 0x118   : > { %v244_v12 = vmul.f32 1.442695, %v228_v20  ;;  %v246_v15 = vmul.f32 1.442695, %v229_v10  ;;  %v254_v36 = vmul.f32 1.442695, %v233_v19 }
 0x119   : > { %v1500_v14 = vpop.xlane.xlu0 %208  ;;  %v1508_v33 = vpop.xlane.xlu1 %214  ;;  %v252_v25 = vmul.f32 1.442695, %v232_v27  ;;  %v482_v20 = vmul.f32 1.442695, %v481_v35  ;;  %v618_v19 = vld [vmem:[#allocation3] sm:$0x3] }
 0x11a   : > { %v230_v18 = vsub.f32 %v1334_v30, %v1500_v14  ;;  %v231_v32 = vsub.f32 %v1336_v31, %v1500_v14  ;;  %1030 = vpow2.f32 %v244_v12  ;;  %v235_v37 = vsub.f32 %v1332_v29, %v1508_v33 }
 0x11b   : > { %1032 = vpow2.f32 %v246_v15  ;;  %v234_v31 = vsub.f32 %v1330_v28, %v1508_v33 }
 0x11c   : > { %v248_v26 = vmul.f32 1.442695, %v230_v18  ;;  %v250_v13 = vmul.f32 1.442695, %v231_v32  ;;  %v258_v38 = vmul.f32 1.442695, %v235_v37 }
 0x11d   : > { %v1514_v30 = vpop.xlane.xlu0 %217  ;;  %v1520_v40 = vpop.xlane.xlu1 %220  ;;  %v256_v42 = vmul.f32 1.442695, %v234_v31 }
 0x11e   : > { %1034 = vpow2.f32 %v248_v26  ;;  %v237_v39 = vsub.f32 %v1371_v52, %v1514_v30  ;;  %v236_v29 = vsub.f32 %v1366_v49, %v1514_v30  ;;  %v239_v43 = vsub.f32 %v1364_v48, %v1520_v40 }
 0x11f   : > { %1036 = vpow2.f32 %v250_v13  ;;  %v238_v52 = vsub.f32 %v1362_v47, %v1520_v40 }
 0x120   : > { %1038 = vpow2.f32 %v254_v36  ;;  %v262_v44 = vmul.f32 1.442695, %v237_v39  ;;  %v260_v8 = vmul.f32 1.442695, %v236_v29  ;;  %v266_v50 = vmul.f32 1.442695, %v239_v43 }
 0x121   : > { %1040 = vpow2.f32 %v252_v25  ;;  %v1526_v28 = vpop.xlane.xlu0 %223  ;;  %v1532_v51 = vpop.xlane.xlu1 %226  ;;  %v264_v55 = vmul.f32 1.442695, %v238_v52 }
 0x122   : > { %1042 = vpow2.f32 %v258_v38  ;;  %v241_v49 = vsub.f32 %v1383_v60, %v1526_v28  ;;  %v240_v23 = vsub.f32 %v1380_v58, %v1526_v28  ;;  %v243_v47 = vsub.f32 %v1375_v54, %v1532_v51 }
 0x123   : > { %1044 = vpow2.f32 %v256_v42  ;;  %v242_v60 = vsub.f32 %v1373_v53, %v1532_v51 }
 0x124   : > { %v1031_v24 = vpop.eup %1030  ;;  %1046 = vpow2.f32 %v262_v44  ;;  %v270_v56 = vmul.f32 1.442695, %v241_v49  ;;  %v268_v62 = vmul.f32 1.442695, %v240_v23  ;;  %v274_v63 = vmul.f32 1.442695, %v243_v47 }
 0x125   : > { %v1033_v34 = vpop.eup %1032  ;;  %1048 = vpow2.f32 %v260_v8  ;;  %v272_v58 = vmul.f32 1.442695, %v242_v60 }
 0x126   : > { %340 = vmatprep.mubr.f32.mxu0 %v1033_v34  ;;  %1050 = vpow2.f32 %v266_v50 }
 0x127   : > { %341 = vmatmul.mubr.f32.vlgmr.msra.gmra.mrb[0].mxu0 %v1031_v24  ;;  %1052 = vpow2.f32 %v264_v55 }
 0x128   : > { %v1035_v45 = vpop.eup %1034  ;;  %1054 = vpow2.f32 %v270_v56 }
 0x129   : > { %v1037_v46 = vpop.eup %1036  ;;  %1056 = vpow2.f32 %v268_v62 }
 0x12a   : > { %345 = vmatprep.mubr.f32.mxu0 %v1037_v46  ;;  %v1039_v48 = vpop.eup %1038  ;;  %1058 = vpow2.f32 %v274_v63 }
 0x12b   : > { %346 = vmatmul.mubr.f32.gmra.mrb[2].mxu0 %v1035_v45  ;;  %v1041_v57 = vpop.eup %1040  ;;  %1060 = vpow2.f32 %v272_v58 }
 0x12c   : > { %350 = vmatprep.mubr.f32.mxu0 %v1039_v48  ;;  %v1043_v59 = vpop.eup %1042  ;;  %1062 = vpow2.f32 %v482_v20 }
 0x12d   : > { %v1045_v0 = vpop.eup %1044 }
 0x12e   : > { %v1047_v1 = vpop.eup %1046 }
 0x12f   : > { %351 = vmatmul.mubr.f32.gmra.mrb[4].mxu0 %v1041_v57  ;;  %v1049_v54 = vpop.eup %1048 }
 0x130   : > { %355 = vmatprep.mubr.f32.mxu0 %v1043_v59  ;;  %v1051_v2 = vpop.eup %1050 }
 0x131   : > { %v1053_v3 = vpop.eup %1052 }
 0x132   : > { %v1055_v4 = vpop.eup %1054 }
 0x133   : > { %356 = vmatmul.mubr.f32.gmra.mrb[6].mxu0 %v1045_v0  ;;  %v1057_v53 = vpop.eup %1056 }
 0x134   : > { %360 = vmatprep.mubr.f32.mxu0 %v1047_v1  ;;  %v1059_v41 = vpop.eup %1058 }
 0x135   : > { %v1061_v5 = vpop.eup %1060 }
 0x136   : > { %v1063_v18 = vpop.eup %1062 }
 0x137   : > { %361 = vmatmul.mubr.f32.gmra.mrb[8].mxu0 %v1049_v54  ;;  %v619_v26 = vmul.f32 %v1063_v18, %v618_v19 }
 0x138   : > { %365 = vmatprep.mubr.f32.mxu0 %v1051_v2 }
 0x13b   : > { %366 = vmatmul.mubr.f32.gmra.mrb[10].mxu0 %v1053_v3 }
 0x13c   : > { %370 = vmatprep.mubr.f32.mxu0 %v1055_v4 }
 0x13f   : > { %371 = vmatmul.mubr.f32.gmra.mrb[12].mxu0 %v1057_v53 }
 0x140   : > { %375 = vmatprep.mubr.f32.mxu0 %v1059_v41 }
 0x143   : > { %376 = vmatmul.mubr.f32.gmra.mrb[14].mxu0 %v1061_v5 }
 0x19d   : > { %v613_v10 = vpop.f32.mrb[0].mxu1 }
 0x19e   : > { %v615_v12 = vpop.f32.mrb[1].mxu1 }
 0x19f   : > { %v622_v15 = vcombine.low %v613_v10, %v615_v12 }
 0x1a1   : > { %v629_v32 = vrot.slane %v622_v15, %v1424_v61 }
 0x1a3   : > { %v636_v13 = vrot.slane %v629_v32, %v1424_v61 }
 0x1a5   : > { %v638_v27 = vadd.f32 %v636_v13, %v619_v26 }
 0x1a7   : > { %643 = vst.msk [vmem:[#allocation3] sm:$0x3] %vm1446_vm14, %v638_v27 }
 0x1fa   : > { %v878_v36 = vpop.f32.mrb[0].mxu0 }
 0x1fb   : > { %v879_v37 = vpop.f32.mrb[1].mxu0 }
 0x1fc   : > { %v880_v25 = vadd.f32 %v879_v37, %v878_v36 }
 0x1fe   : > { %1064 = vlog2.f32 %v880_v25  ;;  %v881_v11 = vpop.f32.mrb[2].mxu0 }
 0x1ff   : > { %v882_v22 = vpop.f32.mrb[3].mxu0 }
 0x200   : > { %v883_v35 = vadd.f32 %v882_v22, %v881_v11 }
 0x202   : > { %1066 = vlog2.f32 %v883_v35  ;;  %v884_v31 = vpop.f32.mrb[4].mxu0  ;;  %v716_v35 = vpop.xlane.xlu1 %715 }
 0x203   : > { %v885_v38 = vpop.f32.mrb[5].mxu0 }
 0x204   : > { %v886_v39 = vadd.f32 %v885_v38, %v884_v31 }
 0x206   : > { %1068 = vlog2.f32 %v886_v39  ;;  %v887_v24 = vpop.f32.mrb[6].mxu0 }
 0x207   : > { %v888_v42 = vpop.f32.mrb[7].mxu0 }
 0x208   : > { %v1065_v29 = vpop.eup %1064  ;;  %v889_v61 = vadd.f32 %v888_v42, %v887_v24 }
 0x209   : > { %v382_v34 = vmul.f32 0.6931472, %v1065_v29 }
 0x20a   : > { %1070 = vlog2.f32 %v889_v61  ;;  %v890_v21 = vpop.f32.mrb[8].mxu0 }
 0x20b   : > { %v891_v43 = vpop.f32.mrb[9].mxu0  ;;  %v397_v52 = vadd.f32 %v382_v34, %v1492_v6 }
 0x20c   : > { %v1067_v44 = vpop.eup %1066  ;;  %v892_v45 = vadd.f32 %v891_v43, %v890_v21 }
 0x20d   : > { %v384_v8 = vmul.f32 0.6931472, %v1067_v44  ;;  %v407_v23 = vsel %vm406_vm4, %v397_v52, 0.0 }
 0x20e   : > { %1072 = vlog2.f32 %v892_v45  ;;  %v893_v46 = vpop.f32.mrb[10].mxu0  ;;  %v683_v45 = vld [vmem:[#allocation4] sm:$0x1] }
 0x20f   : > { %v398_v50 = vadd.f32 %v384_v8, %v1500_v14  ;;  %v894_v49 = vpop.f32.mrb[11].mxu0 }
 0x210   : > { %v1069_v48 = vpop.eup %1068  ;;  %v895_v55 = vadd.f32 %v894_v49, %v893_v46  ;;  %v732_v49 = vld [vmem:[#allocation3] sm:$0x3] (!%p839_p7) }
 0x211   : > { %v408_v47 = vsel %vm406_vm4, %v398_v50, 0.0  ;;  %v386_v56 = vmul.f32 0.6931472, %v1069_v48 }
 0x212   : > { %v409_v57 = vadd.f32 %v408_v47, %v407_v23  ;;  %1074 = vlog2.f32 %v895_v55  ;;  %v896_v59 = vpop.f32.mrb[12].mxu0  ;;  %v731_v55 = vld [vmem:[#allocation2] sm:$0x3] (!%p839_p7) }
 0x213   : > { %v399_v60 = vadd.f32 %v386_v56, %v1494_v7  ;;  %v897_v6 = vpop.f32.mrb[13].mxu0 }
 0x214   : > { %v1071_v62 = vpop.eup %1070  ;;  %v898_v63 = vadd.f32 %v897_v6, %v896_v59 }
 0x215   : > { %v410_v0 = vsel %vm406_vm4, %v399_v60, 0.0  ;;  %v388_v1 = vmul.f32 0.6931472, %v1071_v62 }
 0x216   : > { %v411_v14 = vadd.f32 %v410_v0, %v409_v57  ;;  %1076 = vlog2.f32 %v898_v63  ;;  %v899_v58 = vpop.f32.mrb[14].mxu0 }
 0x217   : > { %v400_v54 = vadd.f32 %v388_v1, %v1508_v33  ;;  %v900_v2 = vpop.f32.mrb[15].mxu0 }
 0x218   : > { %v1073_v3 = vpop.eup %1072  ;;  %v901_v4 = vadd.f32 %v900_v2, %v899_v58 }
 0x219   : > { %v412_v53 = vsel %vm406_vm4, %v400_v54, 0.0  ;;  %v390_v41 = vmul.f32 0.6931472, %v1073_v3 }
 0x21a   : > { %v413_v5 = vadd.f32 %v412_v53, %v411_v14  ;;  %1078 = vlog2.f32 %v901_v4 }
 0x21b   : > { %v401_v7 = vadd.f32 %v390_v41, %v1514_v30  ;;  %1080 = vlog2.f32 (!%p839_p7), %v732_v49 }
 0x21c   : > { %v1075_v20 = vpop.eup %1074 }
 0x21d   : > { %v414_v10 = vsel %vm406_vm4, %v401_v7, 0.0  ;;  %v392_v12 = vmul.f32 0.6931472, %v1075_v20 }
 0x21e   : > { %v415_v15 = vadd.f32 %v414_v10, %v413_v5 }
 0x21f   : > { %v402_v18 = vadd.f32 %v392_v12, %v1520_v40  ;;  %v717_v40 = vrot.slane %v716_v35, 4 }
 0x220   : > { %v1077_v19 = vpop.eup %1076 }
 0x221   : > { %v394_v32 = vmul.f32 0.6931472, %v1077_v19  ;;  %v416_v33 = vsel %vm406_vm4, %v402_v18, 0.0  ;;  %v718_v31 = vadd.f32 %v717_v40, %v716_v35 }
 0x222   : > { %v417_v26 = vadd.f32 %v416_v33, %v415_v15 }
 0x223   : > { %v403_v13 = vadd.f32 %v394_v32, %v1526_v28  ;;  %v719_v38 = vrot.slane %v718_v31, 2 }
 0x224   : > { %v1079_v27 = vpop.eup %1078 }
 0x225   : > { %v396_v36 = vmul.f32 0.6931472, %v1079_v27  ;;  %v418_v37 = vsel %vm406_vm4, %v403_v13, 0.0  ;;  %v720_v29 = vadd.f32 %v719_v38, %v718_v31  ;;  %v1081_v48 = vpop.eup (!%p839_p7), %1080 }
 0x226   : > { %v419_v25 = vadd.f32 %v418_v37, %v417_v26  ;;  %v734_v23 = vmul.f32 (!%p839_p7), 0.6931472, %v1081_v48 }
 0x227   : > { %v404_v30 = vadd.f32 %v396_v36, %v1532_v51  ;;  %v721_v34 = vrot.slane %v720_v29, 1  ;;  %v405_v51 = vld [vmem:[#allocation5] sm:$0x1] }
 0x228   : > { %v735_v47 = vadd.f32 (!%p839_p7), %v734_v23, %v731_v55 }
 0x229   : > { %v420_v11 = vsel %vm406_vm4, %v404_v30, 0.0  ;;  %v722_v44 = vadd.f32 %v721_v34, %v720_v29 }
 0x22a   : > { %v421_v22 = vadd.f32 %v420_v11, %v419_v25  ;;  %v740_v56 = vrot.slane (!%p839_p7), %v735_v47, %v487_v17  ;;  %v744_v57 = vrot.slane (!%p839_p7), %v735_v47, %v491_v16 }
 0x22c   : > { %422 = vadd.xlane.f32.xlu0 %v421_v22  ;;  %v748_v59 = vsel (!%p839_p7), %vm747_vm6, %v740_v56, 0.0  ;;  %v749_v60 = vsel (!%p839_p7), %vm747_vm6, %v744_v57, 0.0 }
 0x22d   : > { %v750_v6 = vadd.f32 (!%p839_p7), %v749_v60, %v748_v59 }
 0x230   : > { %751 = vadd.xlane.f32.xlu0 (!%p839_p7), %v750_v6 }
 0x2b9   : > { %v423_v39 = vpop.xlane.xlu0 %422 }
 0x2ba   : > { %v424_v24 = vrot.slane %v423_v39, 4 }
 0x2bc   : > { %v425_v42 = vadd.f32 %v424_v24, %v423_v39 }
 0x2bd   : > { %v752_v62 = vpop.xlane.xlu0 (!%p839_p7), %751 }
 0x2be   : > { %v426_v28 = vrot.slane %v425_v42, 2  ;;  %v753_v63 = vrot.slane (!%p839_p7), %v752_v62, 4 }
 0x2c0   : > { %v427_v61 = vadd.f32 %v426_v28, %v425_v42  ;;  %v754_v0 = vadd.f32 (!%p839_p7), %v753_v63, %v752_v62 }
 0x2c2   : > { %v428_v21 = vrot.slane %v427_v61, 1  ;;  %v755_v1 = vrot.slane (!%p839_p7), %v754_v0, 2 }
 0x2c4   : > { %v429_v43 = vadd.f32 %v428_v21, %v427_v61  ;;  %v756_v14 = vadd.f32 (!%p839_p7), %v755_v1, %v754_v0 }
 0x2c6   : > { %936 = vpush %v429_v43  ;;  %v757_v58 = vrot.slane (!%p839_p7), %v756_v14, 1 }
 0x2c7   : > { %938 = vpush %v722_v44 }
 0x2c8   : > { %v758_v54 = vadd.f32 (!%p839_p7), %v757_v58, %v756_v14 }
 0x2ca   : > { %940 = vpush (!%p839_p7), %v758_v54 }
 0x2f6   : > { %730 = sbr.rel (%p839_p7) target bundleno = 783 (0x30f), region = 40 }
 0x2f7   : > { %s937_s25 = spop %936 }
 0x2f8   : > { %v431_v52 = vstv %s937_s25  ;;  %s939_s26 = spop %938 }
 0x2f9   : > { %v432_v8 = vadd.f32 %v431_v52, %v405_v51  ;;  %v724_v46 = vstv %s939_s26 }
 0x2fa   : > { %v725_v50 = vadd.f32 %v724_v46, %v683_v45 }
 0x2fb   : > { %434 = vst.msk [vmem:[#allocation5] sm:$0x1] %vm433_vm5, %v432_v8  ;;  %s941_s27 = spop (!%p839_p7), %940 }
 0x2fc   : > { %726 = vst.msk [vmem:[#allocation4] sm:$0x1] %vm433_vm5, %v725_v50  ;;  %v760_v17 = vstv (!%p839_p7), %s941_s27 }
 0x302   : > { %v763_v4 = vld [vmem:[#allocation5] sm:$0x1] }
 0x303   : > { %v761_v2 = vld [vmem:[#allocation4] sm:$0x1] }
 0x304   : > { %v762_v3 = vmul.f32 2.0, %v761_v2 }
 0x306   : > { %v764_v53 = vsub.f32 %v762_v3, %v763_v4 }
 0x308   : > { %v765_v9 = vsub.f32 %v764_v53, %v760_v17 }
 0x30a   : > { %v766_v16 = vsub.f32 0.0, %v765_v9 }
 0x30c   : > { %v768_v41 = vmul.f32 0.001953125, %v766_v16 }
 0x30e   : > { %769 = vst.msk [vmem:[#allocation10] sm:$0x1] %vm433_vm5, %v768_v41 }
 0x30f PF: > { %p953_p8 = scmp.eq.s32.totalorder %s1225_s0, 3  ;;  %s1187_s28 = smov [#allocation10]  }
 0x310   : > { %s777_s29 = sshll.u32 %s1187_s28, 4  ;;  %s778_s29 = int_to_ptr.vmem [resolvable:$true] %s777_s29 }
 0x311   : > { %s1112_s30 = scalar_lea.vmem %s778_s29, 16  ;;  %s1118_s3 = scalar_lea.vmem %s778_s29, 32 }
 0x312   : > { %p1113_p4 = scmp.ne.s32.totalorder %s778_s29, %s1112_s30  ;;  %p1119_p10 = scmp.lt.s32.totalorder %s778_s29, %s778_s29 }
 0x313   : > { %p1120_p12 = scmp.lt.s32.totalorder %s1118_s3, %s1112_s30 }
 0x314   : > { %p1114_p5 = pnand %p1113_p4, %p953_p8 }
 0x315   : > { %p1121_p0 = por %p1120_p12, %p1119_p10 }
 0x316   : > { %p1115_p6 = pneg %p1114_p5 }
 0x318   : > { %p1122_p1 = pnand %p1121_p0, %p1115_p6 }
 0x31a   : > { %1125 = shalt.err (!%p1122_p1)
}
 0x31b   : > { %s1126_s6 = scalar_lea.hbm %s1609_s2, 16 }
 0x31c   : > { %p1127_p2 = scmp.ne.s32.totalorder %s1609_s2, %s1126_s6  ;;  %p1132_p3 = scmp.lt.u32.totalorder %s1126_s6, %s1609_s2 }
 0x31e   : > { %p1128_p11 = pnand %p1127_p2, %p953_p8 }
 0x320   : > { %p1129_p13 = pneg %p1128_p11 }
 0x322   : > { %p1134_p9 = pnand %p1132_p3, %p1129_p13 }
 0x324   : > { %1137 = shalt.err (!%p1134_p9)
}
 0x325   : > { %945 = dma.vmem_to_hbm [thread:$0]  (%p953_p8), %s778_s29, 16, %s1609_s2, [#allocation9]  }
 0x326   : > { %1159 = dma.done.wait (%p953_p8), [#allocation9], 16  }
 0x327   : > { %1161 = vsyncadd (%p953_p8), [#allocation9], 4294967280 }
 0x328 PF: > { %p14_p7 = scmp.ge.s32.totalorder %s1228_s15, 6   ;;  %s1615_s11 = smov %s1168_s12 }
 0x329   : > { %s1616_s12 = smov %s1172_s13  ;;  %s1617_s13 = smov %s1238_s18 }
 0x32a   : > { %s1618_s14 = smov %s1228_s15  ;;  %16 = sbr.rel (!%p14_p7) target bundleno = 6 (0x6), region = 73 }
 0x331   :  { %790 = vsyncpa [#allocation8], 1 }
 0x332   :  { %792 = vsyncpa [#allocation8 + $0x1], 1 }
 0x333   :  { %793 = vsyncpa [#allocation9], 1 }
 0x334   :  { %795 = vsyncpa [#allocation9 + $0x1], 1 }

</bundles_post_ra>
